<compile_context>
chip_gen: v5e
topology: v5e:2x2
jax: 0.10.0
libtpu: 0.0.40
codegen_flags: <defaults>
</compile_context>

<pallas_src>
import jax
import jax.numpy as jnp
from jax.experimental import pallas as pl
from jax.experimental.pallas import tpu as pltpu


def temp_scale_kernel(temp_ref, x_ref, w_ref, b_ref, out_ref, acc_ref):
    # temp_ref: SMEM [1] f32       x_ref: [Bp, tk] bf16
    # w_ref:   [tk, tn] bf16       b_ref: [1, tn] f32
    # out_ref: [Bp, tn] f32        acc_ref: VMEM [Bp, tn] f32
    k = pl.program_id(1)

    # Scalar read + reciprocal up front (off the critical path once pipelined;
    # turns a per-element vector divide into one scalar op + a VPU multiply).
    inv_t = 1.0 / temp_ref[0]

    @pl.when(k == 0)
    def _init():
        # Fold the bias add into accumulator init (f32, matches .float()).
        acc_ref[...] = jnp.broadcast_to(b_ref[...], acc_ref.shape)

    # bf16 x bf16 -> f32 accumulation on the MXU.
    acc_ref[...] += jnp.dot(x_ref[...], w_ref[...],
                            preferred_element_type=jnp.float32)

    @pl.when(k == pl.num_programs(1) - 1)
    def _finalize():
        # Epilogue stays in f32 on the accumulator: logits.float() / temperature.
        out_ref[...] = acc_ref[...] * inv_t


def temperature_scaling_forward(pixel_values, weight, bias, temperature,
                                *, tn=128, tk=256):
    """pixel_values: [B, C, H, W] (NCHW), weight: [F, V], bias: [V],
    temperature: scalar f32. Returns float32 logits [B, V]."""
    B = pixel_values.shape[0]
    F = weight.shape[0]
    V = weight.shape[1]

    # Glue (plain JAX): flatten NCHW -> [B, F].
    x = pixel_values.reshape(B, F)

    # Pad batch to a full sublane group so the LHS / output rows are unmasked.
    B_pad = max(8, ((B + 7) // 8) * 8)
    if B_pad != B:
        x = jnp.pad(x, ((0, B_pad - B), (0, 0)))

    # bf16 operands for the MXU's native path; accumulate in f32.
    # TODO(synk): bf16 operand cast changes numerics slightly vs the f32
    # PyTorch matmul — clear against the model's accuracy budget.
    x_bf = x.astype(jnp.bfloat16)
    w_bf = weight.astype(jnp.bfloat16)

    b2d = bias.reshape(1, V).astype(jnp.float32)
    temp = jnp.asarray(temperature, jnp.float32).reshape(1)

    # Clamp tile sizes to the problem and require clean tiling.
    tn = min(tn, V)
    tk = min(tk, F)
    assert V % tn == 0 and F % tk == 0, "V/F must be multiples of tn/tk"

    grid = (V // tn, F // tk)  # (output-parallel V tiles, reduction F tiles last)

    out = pl.pallas_call(
        temp_scale_kernel,
        out_shape=jax.ShapeDtypeStruct((B_pad, V), jnp.float32),
        grid_spec=pltpu.PrefetchScalarGridSpec(
            num_scalar_prefetch=0,
            grid=grid,
            in_specs=[
                pl.BlockSpec(memory_space=pltpu.SMEM),           # temperature
                pl.BlockSpec((B_pad, tk), lambda j, k: (0, k)),  # x tile
                pl.BlockSpec((tk, tn), lambda j, k: (k, j)),     # W tile
                pl.BlockSpec((1, tn), lambda j, k: (0, j)),      # bias tile
            ],
            out_specs=pl.BlockSpec((B_pad, tn), lambda j, k: (0, j)),
            scratch_shapes=[pltpu.VMEM((B_pad, tn), jnp.float32)],
        ),
        compiler_params=pltpu.CompilerParams(
            dimension_semantics=("parallel", "arbitrary"),
            # Sized for v7x's 64 MiB VMEM/TC (harmless headroom on v5e/v6e).
            vmem_limit_bytes=64 << 20,
        ),
    )(temp, x_bf, w_bf, b2d)

    # Drop batch padding.
    return out[:B]


if __name__ == "__main__":
    # Small shapes consistent with a vision-model logits head.
    B, C, H, W = 2, 4, 16, 16
    FEAT = C * H * W          # 1024
    VOCAB = 128               # lane-aligned logit dimension

    key = jax.random.PRNGKey(0)
    k_x, k_w, k_b = jax.random.split(key, 3)

    pixel_values = jax.random.normal(k_x, (B, C, H, W), dtype=jnp.float32)
    weight = jax.random.normal(k_w, (FEAT, VOCAB), dtype=jnp.float32) * 0.02
    bias = jax.random.normal(k_b, (VOCAB,), dtype=jnp.float32) * 0.01
    temperature = jnp.float32(0.999)   # torch.ones(1) * 0.999

    out = temperature_scaling_forward(pixel_values, weight, bias, temperature)
    out = jax.block_until_ready(out)

    # Reference check (PyTorch semantics, f32). bf16 operand cast in the
    # kernel introduces ~1e-3-level differences at these magnitudes.
    ref = (pixel_values.reshape(B, FEAT) @ weight + bias).astype(jnp.float32) / temperature
    assert out.shape == (B, VOCAB) and out.dtype == jnp.float32
    assert jnp.allclose(out, ref, atol=2e-2, rtol=2e-2), \
        float(jnp.max(jnp.abs(out - ref)))

    # TODO(synk): the real base model (VisionEncoderDecoderModel) and its
    # generate()/save_pretrained() paths have no Pallas equivalent; only the
    # logits head + temperature scaling hot path is implemented here.
    print("KERNEL_OK")
</pallas_src>

<mosaic_0001>
module attributes {stable_mosaic.version = 11 : i64} {
  func.func @temp_scale_kernel(%arg0: i32, %arg1: i32, %arg2: memref<1xf32, #tpu.memory_space<smem>>, %arg3: memref<8x256xbf16, #tpu.memory_space<vmem>>, %arg4: memref<256x128xbf16, #tpu.memory_space<vmem>>, %arg5: memref<1x128xf32, #tpu.memory_space<vmem>>, %arg6: memref<8x128xf32, #tpu.memory_space<vmem>>, %arg7: memref<8x128xf32, #tpu.memory_space<vmem>>) attributes {dimension_semantics = [#tpu.dimension_semantics<parallel>, #tpu.dimension_semantics<arbitrary>], iteration_bounds = array<i64: 1, 4>, scalar_prefetch = 0 : i64, scratch_operands = 1 : i64, tpu.core_type = #tpu.core_type<tc>, window_params = [{transform_indices = @transform_0, window_bounds = array<i64: 1>}, {transform_indices = @transform_1, window_bounds = array<i64: 8, 256>}, {transform_indices = @transform_2, window_bounds = array<i64: 256, 128>}, {transform_indices = @transform_3, window_bounds = array<i64: 1, 128>}, {transform_indices = @transform_4, window_bounds = array<i64: 8, 128>}]} {
    %c0 = arith.constant 0 : index
    %0 = memref.load %arg2[%c0] : memref<1xf32, #tpu.memory_space<smem>>
    %cst = arith.constant 1.000000e+00 : f32
    %1 = arith.divf %cst, %0 : f32
    %c0_i32 = arith.constant 0 : i32
    %2 = arith.cmpi eq, %arg1, %c0_i32 : i32
    %3 = arith.extui %2 : i1 to i32
    %c0_i32_0 = arith.constant 0 : i32
    %4 = arith.cmpi ne, %3, %c0_i32_0 : i32
    scf.if %4 {
      %c0_11 = arith.constant 0 : index
      %c0_12 = arith.constant 0 : index
      %14 = vector.load %arg5[%c0_11, %c0_12] : memref<1x128xf32, #tpu.memory_space<vmem>>, vector<1x128xf32>
      %15 = vector.shape_cast %14 : vector<1x128xf32> to vector<1x128xf32>
      %16 = vector.broadcast %15 : vector<1x128xf32> to vector<8x128xf32>
      %c0_13 = arith.constant 0 : index
      %c0_14 = arith.constant 0 : index
      %17 = vector.load %arg7[%c0_13, %c0_14] : memref<8x128xf32, #tpu.memory_space<vmem>>, vector<8x128xf32>
      tpu.vector_store %arg7[%c0_13, %c0_14], %16 {strides = array<i32>} : memref<8x128xf32, #tpu.memory_space<vmem>>, vector<8x128xf32>,
    } else {
    }
    %c0_1 = arith.constant 0 : index
    %c0_2 = arith.constant 0 : index
    %5 = vector.load %arg7[%c0_1, %c0_2] : memref<8x128xf32, #tpu.memory_space<vmem>>, vector<8x128xf32>
    %c0_3 = arith.constant 0 : index
    %c0_4 = arith.constant 0 : index
    %6 = vector.load %arg3[%c0_3, %c0_4] : memref<8x256xbf16, #tpu.memory_space<vmem>>, vector<8x256xbf16>
    %c0_5 = arith.constant 0 : index
    %c0_6 = arith.constant 0 : index
    %7 = vector.load %arg4[%c0_5, %c0_6] : memref<256x128xbf16, #tpu.memory_space<vmem>>, vector<256x128xbf16>
    %cst_7 = arith.constant dense<0.000000e+00> : vector<8x128xf32>
    %8 = tpu.matmul %6, %7, %cst_7 {dimension_numbers = #tpu.dot_dimension_numbers<[1], [0], [0], [1], [0, 0, 1, 1], [], []>} : vector<8x256xbf16>, vector<256x128xbf16>, vector<8x128xf32> -> vector<8x128xf32>
    %9 = arith.addf %5, %8 : vector<8x128xf32>
    %c0_8 = arith.constant 0 : index
    %c0_9 = arith.constant 0 : index
    %10 = vector.load %arg7[%c0_8, %c0_9] : memref<8x128xf32, #tpu.memory_space<vmem>>, vector<8x128xf32>
    tpu.vector_store %arg7[%c0_8, %c0_9], %9 {strides = array<i32>} : memref<8x128xf32, #tpu.memory_space<vmem>>, vector<8x128xf32>,
    %c3_i32 = arith.constant 3 : i32
    %11 = arith.cmpi eq, %arg1, %c3_i32 : i32
    %12 = arith.extui %11 : i1 to i32
    %c0_i32_10 = arith.constant 0 : i32
    %13 = arith.cmpi ne, %12, %c0_i32_10 : i32
    scf.if %13 {
      %c0_11 = arith.constant 0 : index
      %c0_12 = arith.constant 0 : index
      %14 = vector.load %arg7[%c0_11, %c0_12] : memref<8x128xf32, #tpu.memory_space<vmem>>, vector<8x128xf32>
      %15 = vector.broadcast %1 : f32 to vector<8x128xf32>
      %16 = arith.mulf %14, %15 : vector<8x128xf32>
      %c0_13 = arith.constant 0 : index
      %c0_14 = arith.constant 0 : index
      %17 = vector.load %arg6[%c0_13, %c0_14] : memref<8x128xf32, #tpu.memory_space<vmem>>, vector<8x128xf32>
      tpu.vector_store %arg6[%c0_13, %c0_14], %16 {strides = array<i32>} : memref<8x128xf32, #tpu.memory_space<vmem>>, vector<8x128xf32>,
    } else {
    }
    return
  }
  func.func @transform_0(%arg0: i32, %arg1: i32) -> i32 {
    %c0_i32 = arith.constant 0 : i32
    %c0_i32_0 = arith.constant 0 : i32
    return %c0_i32 : i32
  }
  func.func @transform_1(%arg0: i32, %arg1: i32) -> (i32, i32) {
    %c0_i32 = arith.constant 0 : i32
    %c0_i32_0 = arith.constant 0 : i32
    return %c0_i32, %arg1 : i32, i32
  }
  func.func @transform_2(%arg0: i32, %arg1: i32) -> (i32, i32) {
    %c0_i32 = arith.constant 0 : i32
    return %arg1, %arg0 : i32, i32
  }
  func.func @transform_3(%arg0: i32, %arg1: i32) -> (i32, i32) {
    %c0_i32 = arith.constant 0 : i32
    %c0_i32_0 = arith.constant 0 : i32
    return %c0_i32, %arg0 : i32, i32
  }
  func.func @transform_4(%arg0: i32, %arg1: i32) -> (i32, i32) {
    %c0_i32 = arith.constant 0 : i32
    %c0_i32_0 = arith.constant 0 : i32
    return %c0_i32, %arg0 : i32, i32
  }
}

</mosaic_0001>

<bundles_post_ra>
// kernel: tpu_custom_call.1
= control target key start
LH: loop header
LB: loop body
LE: loop exit
PB: predicated region body
PF: predicated region fallthrough
CT: control target
= control target key end

     0   :  { %s1086_s0 = inlined_call_operand.<no memory space> [shape: f32[1], index: 0, kind: input, shape index: {}]   ;;  %s1087_s1 = inlined_call_operand.hbm [shape: bf16[8,1024], index: 1, kind: input, shape index: {}]   ;;  %s1088_s2 = inlined_call_operand.hbm [shape: bf16[1024,128], index: 2, kind: input, shape index: {}]   ;;  %s1089_s3 = inlined_call_operand.vmem [shape: f32[1,128], index: 3, kind: input, shape index: {}]   ;;  %s1090_s4 = inlined_call_operand.hbm [shape: f32[8,128], index: 4, kind: output, shape index: {}]  }
   0x1   :  { %9 = sst [smem:[#allocation3]] %s1086_s0 }
   0x2   :  { %10 = vsyncpa [#allocation5], 0 }
   0x3   :  { %12 = vsyncpa [#allocation5 + $0x1], 0 }
   0x4   :  { %13 = vsyncpa [#allocation8], 0 }
   0x5   :  { %15 = vsyncpa [#allocation8 + $0x1], 0 }
   0x6   :  { %16 = vsyncpa [#allocation6], 0  ;;  %s945_s17 = smov 0   ;;  %s947_s18 = smov 0  }
   0x7   :  { %s949_s19 = smov 0   ;;  %s951_s20 = smov 0  }
   0x8   :  { %s953_s21 = smov 0   ;;  %s955_s22 = smov 0  }
   0x9 LB: > { %s591_s0 = sadd.s32 4294967295, %s912_s22   ;;  %s31_s23 = sadd.s32 1, %s908_s21  ;;  %s912_s22 = sphi %s955_s22, %s22_s22   ;;  %s908_s21 = sphi %s953_s21, %s1098_s21   ;;  %s904_s20 = sphi %s951_s20, %s1097_s20   ;;  %s900_s19 = sphi %s949_s19, %s1096_s19   ;;  %s896_s18 = sphi %s947_s18, %s1095_s18   ;;  %s892_s17 = sphi %s945_s17, %s1094_s17  }
   0xa   : > { %p32_p0 = scmp.ge.s32.totalorder %s31_s23, 4  ;;  %s62_s24 = sadd.s32 1, %s900_s19 }
   0xb   : > { %p69_p1 = scmp.ne.s32.totalorder %s900_s19, %s896_s18  ;;  %p70_p2 = scmp.eq.s32.totalorder %s912_s22, 0 }
   0xc   : > { %s1100_s23 = smov (%p32_p0, %s31_s23), 0  ;;  %p75_p4 = scmp.ne.s32.totalorder %s896_s18, %s892_s17 }
   0xd   : > { %p981_p3 = por %p70_p2, %p69_p1  ;;  %s59_s26 = ssub.s32 %s908_s21, %s1100_s23 }
   0xe   : > { %p76_p5 = scmp.eq.s32.totalorder %s591_s0, 0  ;;  %p60_p6 = scmp.eq.s32.totalorder %s59_s26, 0 }
   0xf   : > { %p709_p8 = scmp.lt.s32.totalorder %s912_s22, 4  ;;  %s999_s29 = sand.u32 1, %s900_s19  }
  0x10   : > { %p990_p7 = por %p76_p5, %p75_p4  ;;  %s674_s30 = sshll.u32 %s908_s21, 3 }
  0x11   : > { %s996_s28 = scalar_select %p60_p6, %s900_s19, %s62_s24  }
  0x12   : > { %s595_s5 = sshll.u32 %s999_s29, 3  ;;  %s197_s8 = scalar_lea.hbm %s1087_s1, %s674_s30 }
  0x13   : > { %s199_s9 = sshll.u32 %s197_s8, 4  ;;  %s192_s10 = scalar_lea.vmem [#allocation4], %s595_s5  ;;  %s200_s9 = int_to_ptr.hbm [resolvable:$true] %s199_s9 }
  0x14   : > { %s201_s11 = sshll.u32 %s192_s10, 4  ;;  %p1008_p9 = pnand %p709_p8, %p981_p3  ;;  %s202_s11 = int_to_ptr.vmem [resolvable:$true] %s201_s11 }
  0x15   : > { %p601_p10 = scmp.ge.s32.totalorder %s912_s22, 1  ;;  %p229_p11 = scmp.lt.s32.totalorder %s912_s22, 5 }
  0x16   : > { %s598_s13 = sshll.u32 %s999_s29, 7  ;;  %s189_s14 = scalar_lea.sflag [#allocation5], %s999_s29 }
  0x17   : > { %705 = dma.hbm_to_vmem [thread:$0]  (!%p1008_p9), %s200_s9, 128, %s202_s11, %s189_s14  }
  0x18   : > { %p230_p12 = pnand %p601_p10, %p229_p11  ;;  %s675_s15 = sshll.u32 %s908_s21, 7 }
  0x19   : > { %s212_s16 = scalar_lea.vmem [#allocation7], %s598_s13  ;;  %s218_s25 = scalar_lea.hbm %s1088_s2, %s675_s15 }
  0x1a   : > { %s221_s17 = sshll.u32 %s212_s16, 4  ;;  %s219_s30 = sshll.u32 %s218_s25, 4  ;;  %s222_s17 = int_to_ptr.vmem [resolvable:$true] %s221_s17  ;;  %s220_s30 = int_to_ptr.hbm [resolvable:$true] %s219_s30 }
  0x1b   : > { %s209_s5 = scalar_lea.sflag [#allocation8], %s999_s29  ;;  %s914_s6 = smov 64  }
  0x1c   : > { %s915_s7 = smov 4   ;;  %233 = sbr.rel (%p230_p12) target bundleno = 293 (0x125), region = 36 }
  0x1d   : > { %708 = dma.hbm_to_vmem [thread:$0]  (!%p1008_p9), %s220_s30, 2048, %s222_s17, %s209_s5, %s914_s6, %s914_s6, %s915_s7  }
  0x1e   : > { %s235_s8 = sand.u32 (!%p230_p12), 1, %s896_s18  }
  0x1f   : > { %s602_s9 = sshll.u32 (!%p230_p12), %s235_s8, 3  ;;  %s236_s10 = scalar_lea.sflag (!%p230_p12), [#allocation5], %s235_s8 }
  0x20   : > { %s1026_s11 = scalar_lea.vmem (!%p230_p12), [#allocation4], %s602_s9 }
  0x21   : > { %879 = dma.done.wait (%p990_p7), %s236_s10, 128  }
  0x22   : > { %881 = vsyncadd (%p990_p7), %s236_s10, 4294967168  ;;  %s603_s13 = sshll.u32 %s235_s8, 7  ;;  %s246_s29 = scalar_lea.sflag [#allocation8], %s235_s8 }
  0x23   : > { %s1032_s14 = scalar_lea.vmem [#allocation7], %s603_s13 }
  0x24   : > { %883 = dma.done.wait (%p990_p7), %s246_s29, 2048  }
  0x25   : > { %885 = vsyncadd (%p990_p7), %s246_s29, 4294965248  ;;  %s283_s12 = sld [smem:[#allocation3]]  ;;  %p604_p13 = scmp.ne.s32.totalorder %s904_s20, 0 }
  0x2b   : > { %v284_v0 = vstv %s283_s12 }
  0x2c   : > { %763 = vrcp.f32 %v284_v0  ;;  %v296_v3 = vand.u32 2147483648, %v284_v0  ;;  %vm290_vm0 = vweird.f32 %v284_v0  ;;  %v294_v5 = vand.u32 2147483647, %v284_v0 }
  0x2e   : > { %v297_v7 = vor.u32 1.1754944e-38, %v296_v3  ;;  %vm295_vm3 = vcmp.eq.f32.partialorder %v294_v5, 8.507059e+37 }
  0x32   : > { %v764_v1 = vpop.eup %763 }
  0x33   : > { %v286_v2 = vmul.f32 %v764_v1, %v284_v0  ;;  %vm291_vm1 = vweird.f32 %v764_v1 }
  0x34   : > { %vm292_vm2 = vmor %vm290_vm0, %vm291_vm1 }
  0x35   : > { %v287_v4 = vsub.f32 1.0, %v286_v2 }
  0x37   : > { %v288_v6 = vmul.f32 %v764_v1, %v287_v4 }
  0x39   : > { %v289_v8 = vadd.f32 %v764_v1, %v288_v6 }
  0x3b   : > { %v293_v9 = vsel %vm292_vm2, %v764_v1, %v289_v8 }
  0x3c   : > { %v298_v10 = vsel %vm295_vm3, %v297_v7, %v293_v9 }
  0x3d   : > { %692 = vpush %v298_v10 }
  0x6a   : > { %303 = sbr.rel (%p604_p13) target bundleno = 113 (0x71), region = 48 }
  0x6e   : > { %s1038_s27 = spop %692 }
  0x6f   : > { %v765_v11 = vld [vmem:[%s1089_s3] ss:$0 sm:$0xff] }
  0x70   : > { %308 = vst [vmem:[#allocation2] sm:$0xff] %v765_v11 }
  0x71 PF: > { %v683_v12 = vld [vmem:[%s1032_s14 + $0x38] sm:$0xff]  ;;  %v682_v14 = vld [vmem:[%s1032_s14 + $0x30] sm:$0xff]  ;;  %v681_v16 = vld [vmem:[%s1032_s14 + $0x28] sm:$0xff]  ;;  %p669_p0 = scmp.ne.s32.totalorder %s904_s20, 3 }
  0x72   : > { %v691_v13 = vld [vmem:[%s1032_s14 + $0x78] sm:$0xff]  ;;  %446 = vmatpush.bf16.msra.mxu0 %v683_v12  ;;  %v690_v15 = vld [vmem:[%s1032_s14 + $0x70] sm:$0xff]  ;;  %v689_v17 = vld [vmem:[%s1032_s14 + $0x68] sm:$0xff] }
  0x73   : > { %459 = vmatpush.bf16.msra.mxu1 %v691_v13  ;;  %v680_v18 = vld [vmem:[%s1032_s14 + $0x20] sm:$0xff]  ;;  %v679_v20 = vld [vmem:[%s1032_s14 + $0x18] sm:$0xff]  ;;  %v678_v22 = vld [vmem:[%s1032_s14 + $0x10] sm:$0xff] }
  0x74   : > { %v688_v19 = vld [vmem:[%s1032_s14 + $0x60] sm:$0xff]  ;;  %v687_v21 = vld [vmem:[%s1032_s14 + $0x58] sm:$0xff]  ;;  %v686_v23 = vld [vmem:[%s1032_s14 + $0x50] sm:$0xff] }
  0x75   : > { %v677_v24 = vld [vmem:[%s1032_s14 + $0x8] sm:$0xff]  ;;  %v310_v26 = vld [vmem:[%s1026_s11] sm:$0xff]  ;;  %v676_v29 = vld [vmem:[%s1032_s14] sm:$0xff] }
  0x76   : > { %447 = vmatpush.bf16.msra.mxu0 %v682_v14  ;;  %v685_v25 = vld [vmem:[%s1032_s14 + $0x48] sm:$0xff]  ;;  %v344_v27 = vunpack.c.l.b16 %v310_v26  ;;  %v345_v28 = vunpack.c.h.b16 %v310_v26  ;;  %v684_v30 = vld [vmem:[%s1032_s14 + $0x40] sm:$0xff] }
  0x77   : > { %460 = vmatpush.bf16.msra.mxu1 %v690_v15  ;;  %v309_v34 = vld [vmem:[#allocation2] sm:$0xff] }
  0x78   : > { %v346_v31 = vpack.c.b16 %v344_v27, %v344_v27  ;;  %v347_v32 = vpack.c.b16 %v345_v28, %v345_v28 }
  0x7a   : > { %448 = vmatpush.bf16.msra.mxu0 %v681_v16 }
  0x7b   : > { %461 = vmatpush.bf16.msra.mxu1 %v689_v17 }
  0x7e   : > { %449 = vmatpush.bf16.msra.mxu0 %v680_v18 }
  0x7f   : > { %462 = vmatpush.bf16.msra.mxu1 %v688_v19 }
  0x82   : > { %450 = vmatpush.bf16.msra.mxu0 %v679_v20 }
  0x83   : > { %463 = vmatpush.bf16.msra.mxu1 %v687_v21 }
  0x86   : > { %451 = vmatpush.bf16.msra.mxu0 %v678_v22 }
  0x87   : > { %464 = vmatpush.bf16.msra.mxu1 %v686_v23 }
  0x8a   : > { %452 = vmatpush.bf16.msra.mxu0 %v677_v24 }
  0x8b   : > { %465 = vmatpush.bf16.msra.mxu1 %v685_v25 }
  0x8e   : > { %453 = vmatpush.bf16.msra.mxu0 %v676_v29 }
  0x8f   : > { %466 = vmatpush.bf16.msra.mxu1 %v684_v30 }
  0x91   : > { %454 = vmatmul.bf16.vlgmr.msra.gmra.mxu0 %v346_v31 }
  0x92   : > { %467 = vmatmul.bf16.vlgmr.msra.gmra.mxu1 %v347_v32 }
 0x10e   : > { %v455_v33 = vpop.f32.mrf.mxu0 }
 0x10f   : > { %v468_v35 = vpop.f32.mrf.mxu1 }
 0x110   : > { %v469_v36 = vadd.f32 %v468_v35, %v455_v33 }
 0x112   : > { %v472_v37 = vadd.f32 %v469_v36, %v309_v34 }
 0x113   : > { %477 = sbr.rel (%p669_p0) target bundleno = 287 (0x11f), region = 52 }
 0x114   : > { %473 = vst [vmem:[#allocation2] sm:$0xff] %v472_v37 }
 0x116   : > { %v457_v38 = vpop.f32.mrf.mxu0 }
 0x117   : > { %v470_v39 = vpop.f32.mrf.mxu1 }
 0x118   : > { %v479_v41 = vstv %s1038_s27 }
 0x11b   : > { %v478_v40 = vld [vmem:[#allocation2] sm:$0xff] }
 0x11c   : > { %v480_v42 = vmul.f32 %v479_v41, %v478_v40 }
 0x11e   : > { %481 = vst [vmem:[#allocation9] sm:$0xff] %v480_v42 }
 0x11f PF: > { %p710_p1 = scmp.eq.s32.totalorder %s591_s0, 3  ;;  %s492_s26 = sshll.u32 %s1090_s4, 4  ;;  %s493_s26 = int_to_ptr.hbm [resolvable:$true] %s492_s26 }
 0x120   : > { %s916_s25 = smov [#allocation9]  }
 0x121   : > { %s490_s30 = sshll.u32 %s916_s25, 4  ;;  %s491_s30 = int_to_ptr.vmem [resolvable:$true] %s490_s30 }
 0x122   : > { %699 = dma.vmem_to_hbm [thread:$0]  (%p710_p1), %s491_s30, 128, %s493_s26, [#allocation6]  }
 0x123   : > { %887 = dma.done.wait (%p710_p1), [#allocation6], 128  }
 0x124   : > { %889 = vsyncadd (%p710_p1), [#allocation6], 4294967168 }
 0x125 PF: > { %s22_s22 = sadd.s32 1, %s912_s22   ;;  %s1094_s17 = smov %s896_s18 }
 0x126   : > { %p19_p2 = scmp.ge.s32.totalorder %s22_s22, 6   ;;  %s1095_s18 = smov %s900_s19 }
 0x127   : > { %s1096_s19 = smov %s996_s28  ;;  %s1097_s20 = smov %s908_s21 }
 0x128   : > { %s1098_s21 = smov %s1100_s23  ;;  %21 = sbr.rel (!%p19_p2) target bundleno = 9 (0x9), region = 98 }
 0x12d   :  { %506 = vsyncpa [#allocation5], 1 }
 0x12e   :  { %508 = vsyncpa [#allocation5 + $0x1], 1 }
 0x12f   :  { %509 = vsyncpa [#allocation8], 1 }
 0x130   :  { %511 = vsyncpa [#allocation8 + $0x1], 1 }
 0x131   :  { %512 = vsyncpa [#allocation6], 1 }
 0x132   :  { %514 = vsyncpa [#allocation6 + $0x1], 1 }

</bundles_post_ra>
